<compile_context>
chip_gen: v6e
topology: v6e:2x2x1
jax: 0.10.0
libtpu: 0.0.40
codegen_flags: <defaults>
</compile_context>

<pallas_src>
import functools

import jax
import jax.numpy as jnp
from jax.experimental import pallas as pl
from jax.experimental.pallas import tpu as pltpu


def _sdpa_kernel(q_ref, k_ref, v_ref, o_ref, *, dim):
    # q_ref: (Bblk, Dp); k_ref / v_ref / o_ref: (Bblk, T, Dp) -- one batch block per step.
    k = k_ref[...]
    q3 = q_ref[...][:, None, :]                                   # (Bblk, 1, Dp)

    # Inner-product attention signal on the MXU (completely idle in this memory-bound
    # kernel): batched (T, Dp) x (Dp, 1) matvec with f32 accumulation.  No (Bblk, T, Dp)
    # elementwise product or f32 copy is ever materialized.
    scores = jnp.einsum("btd,bqd->btq", k, q3,
                        preferred_element_type=jnp.float32)       # (Bblk, T, 1) f32

    # Scale in f32 with the *unpadded* dim (zero-padded D columns add 0 to every score).
    scores = scores * (1.0 / float(dim) ** 0.5)

    # Numerically stable softmax over the key axis T (axis 1), in f32.
    m = jnp.max(scores, axis=1, keepdims=True)                    # (Bblk, 1, 1)
    e = jnp.exp(scores - m)                                       # (Bblk, T, 1)
    s = jnp.sum(e, axis=1, keepdims=True)                         # (Bblk, 1, 1)
    # EUP approximate reciprocal (otherwise-idle slot) + one Newton refinement step on a
    # tiny (Bblk, 1, 1) array to retain ~f32 accuracy.
    r = pl.reciprocal(s, approx=True)
    r = r * (2.0 - s * r)
    p = e * r                                                     # (Bblk, T, 1)

    # Broadcast-multiply the attention weights onto values in the values storage dtype.
    # (v6e/v7x run bf16 natively on the VPU; on v5e it promotes internally -- bf16 stays
    # the HBM/VMEM storage dtype either way.)
    v = v_ref[...]
    o_ref[...] = (p.astype(v.dtype) * v).astype(o_ref.dtype)


def _vmem_budget_and_limit():
    """Generation-aware VMEM sizing (v5e/v6e: 128 MiB, v7x: 64 MiB per TensorCore)."""
    mib = 1024 * 1024
    try:
        cap = int(pltpu.get_tpu_info().vmem_capacity_bytes)
    except Exception:  # info unavailable -> assume the smallest (v7x per-TC) VMEM
        cap = 64 * mib
    limit = max(32 * mib, cap - 16 * mib)     # headroom for compiler-internal scratch
    budget = max(24 * mib, limit - 8 * mib)   # extra margin below the scoped limit
    return budget, limit


def _pick_batch_block(B, T, D, k_dtype, q_dtype, v_dtype, vmem_budget_bytes):
    """Pick the batch block size Bblk (B is already padded to a multiple of 8).

    Preferences, in order:
      (a) double-buffered K/V/out tiles + the q row + f32 softmax columns fit the budget,
      (b) >= 4 grid steps when possible (>= 2 steps per TensorCore on v7x with the
          "parallel" batch axis, and prefetch/writeback overlap on single-TC v5e/v6e),
      (c) otherwise >= 2 steps, otherwise the largest fitting block.
    """
    kb = jnp.dtype(k_dtype).itemsize
    qb = jnp.dtype(q_dtype).itemsize
    vb = jnp.dtype(v_dtype).itemsize
    # Double-buffered (BlockSpec pipeline) K, V and out tiles plus the q row, plus small
    # f32 softmax columns (scores / exp / p and their reductions).  No full-tile f32
    # temp: the score contraction accumulates on the MXU.
    per_row = 2 * (T * D * (kb + vb + vb) + D * qb) + 6 * 4 * T
    max_rows = max(1, vmem_budget_bytes // per_row)
    cands = [c for c in range(8, B + 1, 8) if B % c == 0 and c <= max_rows]
    if not cands:
        # Even an 8-row block overflows the budget (huge T*D per row).
        # TODO(synk): add an "arbitrary" T grid axis with a two-pass softmax so K/V
        # stream through VMEM instead of a whole (T, Dp) slab per row being resident.
        return 8
    four_plus = [c for c in cands if B // c >= 4]
    if four_plus:
        return max(four_plus)
    two_plus = [c for c in cands if B // c >= 2]
    return max(two_plus) if two_plus else max(cands)


def scaled_dot_product_attention(query, keys, values):
    """query: (B, D), keys: (B, T, D), values: (B, T, D) -> (B, T, D)."""
    B, T, D = keys.shape
    assert query.shape == (B, D)
    assert values.shape == (B, T, D)

    # Pad D to a multiple of 128 (lane-dense full-width stores / DMAs) and B to a
    # multiple of 8 (sublane rule for the (Bblk, D) query block + guaranteed divisor).
    # Zero padding is exact: padded D columns add 0 to every score; padded batch rows
    # produce a harmless uniform softmax over zero values and are sliced away.
    Dp = -(-D // 128) * 128
    Bp = -(-B // 8) * 8
    q, k, v = query, keys, values
    if Bp != B or Dp != D:
        q = jnp.pad(query, ((0, Bp - B), (0, Dp - D)))
        k = jnp.pad(keys, ((0, Bp - B), (0, 0), (0, Dp - D)))
        v = jnp.pad(values, ((0, Bp - B), (0, 0), (0, Dp - D)))

    budget, limit = _vmem_budget_and_limit()
    bblk = _pick_batch_block(Bp, T, Dp, k.dtype, q.dtype, v.dtype, budget)
    grid = (Bp // bblk,)

    out = pl.pallas_call(
        functools.partial(_sdpa_kernel, dim=D),
        out_shape=jax.ShapeDtypeStruct((Bp, T, Dp), values.dtype),
        grid_spec=pltpu.PrefetchScalarGridSpec(
            num_scalar_prefetch=0,
            grid=grid,
            in_specs=[
                pl.BlockSpec((bblk, Dp), lambda b: (b, 0)),
                pl.BlockSpec((bblk, T, Dp), lambda b: (b, 0, 0)),
                pl.BlockSpec((bblk, T, Dp), lambda b: (b, 0, 0)),
            ],
            out_specs=pl.BlockSpec((bblk, T, Dp), lambda b: (b, 0, 0)),
        ),
        compiler_params=pltpu.CompilerParams(
            dimension_semantics=("parallel",),
            vmem_limit_bytes=limit,
        ),
    )(q, k, v)

    if Bp != B or Dp != D:
        out = out[:B, :, :D]
    return out


def _reference(query, keys, values, dim):
    # Pure-VPU f32 reference (no MXU precision lowering) mirroring the PyTorch module.
    qf = query.astype(jnp.float32)
    kf = keys.astype(jnp.float32)
    vf = values.astype(jnp.float32)
    att = jnp.sum(qf[:, None, :] * kf, axis=-1) / jnp.sqrt(jnp.float32(dim))
    p = jax.nn.softmax(att, axis=1)
    return (p[:, :, None] * vf).astype(values.dtype)


def _run_case(key, B, T, D, dtype=jnp.float32, atol=5e-3, rtol=2e-2):
    kq, kk, kv = jax.random.split(key, 3)
    query = jax.random.normal(kq, (B, D), dtype=dtype)
    keys = jax.random.normal(kk, (B, T, D), dtype=dtype)
    values = jax.random.normal(kv, (B, T, D), dtype=dtype)

    out = jax.block_until_ready(scaled_dot_product_attention(query, keys, values))
    ref = _reference(query, keys, values, D)

    assert out.shape == (B, T, D)
    # Tolerance covers the MXU score contraction (default matmul precision may round f32
    # operands to bf16 on TPU) and the Newton-refined approximate reciprocal.
    assert jnp.allclose(out.astype(jnp.float32), ref.astype(jnp.float32),
                        atol=atol, rtol=rtol), (
        f"mismatch vs reference for B={B}, T={T}, D={D}, dtype={dtype}")


if __name__ == "__main__":
    root = jax.random.PRNGKey(0)
    k1, k2, k3 = jax.random.split(root, 3)
    # Small shape implied by the module: exercises the B->8 and D->128 padding paths.
    _run_case(k1, B=2, T=8, D=32)
    # Lane-dense D=128, multi-step "parallel" batch grid (Bblk=8, 2 grid steps).
    _run_case(k2, B=16, T=64, D=128)
    # bf16 storage path (bf16 MXU inputs, f32 accumulation, f32 softmax).
    _run_case(k3, B=8, T=32, D=128, dtype=jnp.bfloat16, atol=2e-2, rtol=5e-2)
    print("KERNEL_OK")
</pallas_src>

<mosaic_0001>
module attributes {stable_mosaic.version = 11 : i64} {
  func.func @_sdpa_kernel(%arg0: i32, %arg1: memref<8x128xf32, #tpu.memory_space<vmem>>, %arg2: memref<8x8x128xf32, #tpu.memory_space<vmem>>, %arg3: memref<8x8x128xf32, #tpu.memory_space<vmem>>, %arg4: memref<8x8x128xf32, #tpu.memory_space<vmem>>) attributes {dimension_semantics = [#tpu.dimension_semantics<parallel>], iteration_bounds = array<i64: 1>, scalar_prefetch = 0 : i64, scratch_operands = 0 : i64, tpu.core_type = #tpu.core_type<tc>, window_params = [{transform_indices = @transform_0, window_bounds = array<i64: 8, 128>}, {transform_indices = @transform_1, window_bounds = array<i64: 8, 8, 128>}, {transform_indices = @transform_2, window_bounds = array<i64: 8, 8, 128>}, {transform_indices = @transform_3, window_bounds = array<i64: 8, 8, 128>}]} {
    %c0 = arith.constant 0 : index
    %c0_0 = arith.constant 0 : index
    %c0_1 = arith.constant 0 : index
    %0 = vector.load %arg2[%c0, %c0_0, %c0_1] : memref<8x8x128xf32, #tpu.memory_space<vmem>>, vector<8x8x128xf32>
    %c0_2 = arith.constant 0 : index
    %c0_3 = arith.constant 0 : index
    %1 = vector.load %arg1[%c0_2, %c0_3] : memref<8x128xf32, #tpu.memory_space<vmem>>, vector<8x128xf32>
    %2 = vector.shape_cast %1 : vector<8x128xf32> to vector<8x1x128xf32>
    "tpu.trace_start"() <{level = 10 : i32, message = "btd,bqd->btq"}> : () -> ()
    %cst = arith.constant dense<0.000000e+00> : vector<8x8x1xf32>
    %3 = tpu.matmul %0, %2, %cst {dimension_numbers = #tpu.dot_dimension_numbers<[2], [2], [1], [1], [0, 0, 0, 1, 1, 1], [0], [0]>} : vector<8x8x128xf32>, vector<8x1x128xf32>, vector<8x8x1xf32> -> vector<8x8x1xf32>
    "tpu.trace_stop"() : () -> ()
    %cst_4 = arith.constant 0.176776692 : f32
    %4 = vector.broadcast %cst_4 : f32 to vector<8x8x1xf32>
    %5 = arith.mulf %3, %4 : vector<8x8x1xf32>
    %cst_5 = arith.constant dense<0xFF800000> : vector<8x1xf32>
    %6 = vector.multi_reduction <maximumf>, %5, %cst_5 [1] : vector<8x8x1xf32> to vector<8x1xf32>
    %7 = vector.shape_cast %6 : vector<8x1xf32> to vector<8x1x1xf32>
    %8 = vector.broadcast %7 : vector<8x1x1xf32> to vector<8x8x1xf32>
    %9 = arith.subf %5, %8 : vector<8x8x1xf32>
    %10 = math.exp %9 : vector<8x8x1xf32>
    %cst_6 = arith.constant dense<0.000000e+00> : vector<8x1xf32>
    %11 = vector.multi_reduction <add>, %10, %cst_6 [1] : vector<8x8x1xf32> to vector<8x1xf32>
    %12 = vector.shape_cast %11 : vector<8x1xf32> to vector<8x1x1xf32>
    %13 = tpu.reciprocal %12 {approx = true} : vector<8x1x1xf32> -> vector<8x1x1xf32>
    %14 = arith.mulf %12, %13 : vector<8x1x1xf32>
    %cst_7 = arith.constant 2.000000e+00 : f32
    %15 = vector.broadcast %cst_7 : f32 to vector<8x1x1xf32>
    %16 = arith.subf %15, %14 : vector<8x1x1xf32>
    %17 = arith.mulf %13, %16 : vector<8x1x1xf32>
    %18 = vector.broadcast %17 : vector<8x1x1xf32> to vector<8x8x1xf32>
    %19 = arith.mulf %10, %18 : vector<8x8x1xf32>
    %c0_8 = arith.constant 0 : index
    %c0_9 = arith.constant 0 : index
    %c0_10 = arith.constant 0 : index
    %20 = vector.load %arg3[%c0_8, %c0_9, %c0_10] : memref<8x8x128xf32, #tpu.memory_space<vmem>>, vector<8x8x128xf32>
    %21 = vector.broadcast %19 : vector<8x8x1xf32> to vector<8x8x128xf32>
    %22 = arith.mulf %21, %20 : vector<8x8x128xf32>
    %c0_11 = arith.constant 0 : index
    %c0_12 = arith.constant 0 : index
    %c0_13 = arith.constant 0 : index
    %23 = vector.load %arg4[%c0_11, %c0_12, %c0_13] : memref<8x8x128xf32, #tpu.memory_space<vmem>>, vector<8x8x128xf32>
    tpu.vector_store %arg4[%c0_11, %c0_12, %c0_13], %22 {strides = array<i32>} : memref<8x8x128xf32, #tpu.memory_space<vmem>>, vector<8x8x128xf32>,
    return
  }
  func.func @transform_0(%arg0: i32) -> (i32, i32) {
    %c0_i32 = arith.constant 0 : i32
    %c0_i32_0 = arith.constant 0 : i32
    return %arg0, %c0_i32 : i32, i32
  }
  func.func @transform_1(%arg0: i32) -> (i32, i32, i32) {
    %c0_i32 = arith.constant 0 : i32
    %c0_i32_0 = arith.constant 0 : i32
    %c0_i32_1 = arith.constant 0 : i32
    return %arg0, %c0_i32, %c0_i32_0 : i32, i32, i32
  }
  func.func @transform_2(%arg0: i32) -> (i32, i32, i32) {
    %c0_i32 = arith.constant 0 : i32
    %c0_i32_0 = arith.constant 0 : i32
    %c0_i32_1 = arith.constant 0 : i32
    return %arg0, %c0_i32, %c0_i32_0 : i32, i32, i32
  }
  func.func @transform_3(%arg0: i32) -> (i32, i32, i32) {
    %c0_i32 = arith.constant 0 : i32
    %c0_i32_0 = arith.constant 0 : i32
    %c0_i32_1 = arith.constant 0 : i32
    return %arg0, %c0_i32, %c0_i32_0 : i32, i32, i32
  }
}

</mosaic_0001>

<bundles_post_ra>
// kernel: tpu_custom_call.1
= control target key start
LH: loop header
LB: loop body
LE: loop exit
PB: predicated region body
PF: predicated region fallthrough
CT: control target
= control target key end

     0   :  { %8 = vsyncpa [#allocation3], 0  ;;  %s678_s0 = inlined_call_operand.hbm [shape: f32[8,128], index: 0, kind: input, shape index: {}]   ;;  %s679_s1 = inlined_call_operand.hbm [shape: f32[8,8,128], index: 1, kind: input, shape index: {}]   ;;  %s680_s2 = inlined_call_operand.hbm [shape: f32[8,8,128], index: 2, kind: input, shape index: {}]   ;;  %s681_s3 = inlined_call_operand.hbm [shape: f32[8,8,128], index: 3, kind: output, shape index: {}]  }
   0x1   :  { %9 = vsyncpa [#allocation6], 0 }
   0x2   :  { %10 = vsyncpa [#allocation4], 0  ;;  %s573_s12 = smov [#allocation5]  }
   0x3   :  { %s26_s13 = sshll.u32 %s573_s12, 4  ;;  %s27_s13 = int_to_ptr.vmem [resolvable:$true] %s26_s13 }
   0x4   :  { %s495_s14 = scalar_lea.vmem %s27_s13, 1024  ;;  %p500_p1 = scmp.lt.s32.totalorder %s27_s13, %s27_s13 }
   0x5   :  { %p496_p0 = scmp.ne.s32.totalorder %s27_s13, %s495_s14  ;;  %p501_p2 = scmp.lt.s32.totalorder %s495_s14, %s495_s14 }
   0x7   :  { %p502_p3 = por %p501_p2, %p500_p1 }
   0x9   :  { %p503_p4 = pnand %p502_p3, %p496_p0 }
   0xb   :  { %506 = shalt.err (!%p503_p4)
}
   0xc   :  { %s574_s15 = smov 128   ;;  %s575_s16 = smov 8  }
   0xd   :  { %32 = dma.hbm_to_vmem [thread:$0]  %s679_s1, 1024, %s27_s13, [#allocation6], %s574_s15, %s574_s15, %s575_s16  }
   0xe   :  { %s576_s19 = smov [#allocation2]   ;;  %s577_s21 = smov [#allocation7]  }
   0xf   :  { %s17_s20 = sshll.u32 %s576_s19, 4  ;;  %s38_s22 = sshll.u32 %s577_s21, 4  ;;  %s18_s20 = int_to_ptr.vmem [resolvable:$true] %s17_s20  ;;  %s39_s22 = int_to_ptr.vmem [resolvable:$true] %s38_s22 }
  0x10   :  { %s515_s23 = scalar_lea.vmem %s18_s20, 128  ;;  %p520_p6 = scmp.lt.s32.totalorder %s18_s20, %s18_s20 }
  0x11   :  { %p516_p5 = scmp.ne.s32.totalorder %s18_s20, %s515_s23  ;;  %p521_p7 = scmp.lt.s32.totalorder %s515_s23, %s515_s23 }
  0x13   :  { %p522_p8 = por %p521_p7, %p520_p6 }
  0x15   :  { %p523_p9 = pnand %p522_p8, %p516_p5 }
  0x17   :  { %526 = shalt.err (!%p523_p9)
}
  0x18   :  { %20 = dma.hbm_to_vmem [thread:$0]  %s678_s0, 128, %s18_s20, [#allocation3]  }
  0x19   :  { %s535_s26 = scalar_lea.vmem %s39_s22, 1024  ;;  %p540_p11 = scmp.lt.s32.totalorder %s39_s22, %s39_s22 }
  0x1a   :  { %p536_p10 = scmp.ne.s32.totalorder %s39_s22, %s535_s26  ;;  %p541_p12 = scmp.lt.s32.totalorder %s535_s26, %s535_s26 }
  0x1c   :  { %p542_p13 = por %p541_p12, %p540_p11 }
  0x1e   :  { %p543_p0 = pnand %p542_p13, %p536_p10 }
  0x20   :  { %546 = shalt.err (!%p543_p0)
}
  0x21   :  { %44 = dma.hbm_to_vmem [thread:$0]  %s680_s2, 1024, %s39_s22, [#allocation6], %s574_s15, %s574_s15, %s575_s16  }
  0x22   :  { %567 = dma.done.wait [#allocation3], 128  }
  0x23   :  { %568 = vsyncadd [#allocation3], 4294967168 }
  0x24   :  { %569 = dma.done.wait [#allocation6], 2048  }
  0x25   :  { %570 = vsyncadd [#allocation6], 4294965248  ;;  %v68_v0 = vlaneseq  ;;  %v578_v1 = vmov 1966171168   ;;  %v62_v6 = vld [vmem:[#allocation2] sm:$0xff]  ;;  %v54_v13 = vld [vmem:[#allocation5] sm:$0xff] }
  0x26   :  { %v66_v2 = vunpack.c.l.s4 %v578_v1  ;;  %v64_v7 = vcombine.high %v62_v6, %v62_v6  ;;  %v56_v18 = vld [vmem:[#allocation5 + $0x10] sm:$0xff]  ;;  %v55_v19 = vld [vmem:[#allocation5 + $0x8] sm:$0xff]  ;;  %v57_v25 = vld [vmem:[#allocation5 + $0x18] sm:$0xff]  ;;  %v579_v45 = vmov 0   ;;  %vm185_vm0 = vcmask 7168   ;;  %s580_s0 = smov [#allocation8]  }
  0x27   :  { %v69_v3 = vshrl.u32 %v68_v0, 7  ;;  %v58_v32 = vld [vmem:[#allocation5 + $0x20] sm:$0xff]  ;;  %v59_v36 = vld [vmem:[#allocation5 + $0x28] sm:$0xff]  ;;  %v60_v39 = vld [vmem:[#allocation5 + $0x30] sm:$0xff]  ;;  %452 = vset.pattern.permute.xlu0 %v579_v45  ;;  %453 = vset.pattern.permute.xlu1 %v579_v45  ;;  %s431_s2 = sshll.u32 %s580_s0, 4  ;;  %s432_s2 = int_to_ptr.vmem [resolvable:$true] %s431_s2 }
  0x28   :  { %v67_v4 = vunpack.c.0.s8 %v66_v2  ;;  %v61_v42 = vld [vmem:[#allocation5 + $0x38] sm:$0xff]  ;;  %s547_s28 = scalar_lea.vmem %s432_s2, 1024  ;;  %p552_p2 = scmp.lt.s32.totalorder %s432_s2, %s432_s2 }
  0x29   :  { %v115_v9 = vsub.s32 0, %v69_v3  ;;  %p548_p1 = scmp.ne.s32.totalorder %s432_s2, %s547_s28  ;;  %p553_p3 = scmp.lt.s32.totalorder %s547_s28, %s547_s28 }
  0x2a   :  { %v70_v5 = vsub.s32 %v67_v4, %v69_v3 }
  0x2b   :  { %p554_p4 = por %p553_p3, %p552_p2 }
  0x2c   :  { %v71_v8 = vrot.slane %v62_v6, %v70_v5  ;;  %v78_v12 = vrot.slane %v64_v7, %v70_v5 }
  0x2d   :  { %p555_p5 = pnand %p554_p4, %p548_p1 }
  0x2e   :  { %v87_v10 = vrot.slane %v71_v8, %v70_v5  ;;  %v79_v11 = vcombine.high %v71_v8, %v71_v8  ;;  %v94_v17 = vrot.slane %v78_v12, %v70_v5  ;;  %v80_v20 = vcombine.high %v78_v12, %v78_v12 }
  0x30   :  { %v116_v14 = vrot.slane %v87_v10, %v115_v9  ;;  %v109_v15 = vcombine.high %v87_v10, %v87_v10  ;;  %v101_v16 = vrot.slane %v79_v11, %v70_v5  ;;  %v148_v26 = vrot.slane %v94_v17, %v115_v9 }
  0x31   :  { %v108_v27 = vrot.slane %v80_v20, %v70_v5  ;;  %v110_v31 = vcombine.high %v94_v17, %v94_v17 }
  0x32   :  { %v118_v21 = vmul.f32 %v116_v14, %v54_v13  ;;  %v132_v22 = vrot.slane %v109_v15, %v115_v9  ;;  %v124_v23 = vrot.slane %v101_v16, %v115_v9  ;;  %v111_v24 = vcombine.high %v101_v16, %v101_v16 }
  0x33   :  { %v156_v34 = vrot.slane %v108_v27, %v115_v9  ;;  %v112_v35 = vcombine.high %v108_v27, %v108_v27  ;;  %v150_v37 = vmul.f32 %v148_v26, %v58_v32  ;;  %v164_v38 = vrot.slane %v110_v31, %v115_v9 }
  0x34   :  { %119 = vadd.xlane.f32.xlu0 %v118_v21  ;;  %v134_v28 = vmul.f32 %v132_v22, %v56_v18  ;;  %v126_v29 = vmul.f32 %v124_v23, %v55_v19  ;;  %v140_v30 = vrot.slane %v111_v24, %v115_v9 }
  0x35   :  { %v158_v40 = vmul.f32 %v156_v34, %v59_v36  ;;  %v172_v41 = vrot.slane %v112_v35, %v115_v9  ;;  %v166_v43 = vmul.f32 %v164_v38, %v60_v39 }
  0x36   :  { %135 = vadd.xlane.f32.xlu1 %v134_v28  ;;  %v142_v33 = vmul.f32 %v140_v30, %v57_v25 }
  0x37   :  { %v174_v44 = vmul.f32 %v172_v41, %v61_v42 }
  0x38   :  { %127 = vadd.xlane.f32.xlu0 %v126_v29 }
  0x3a   :  { %143 = vadd.xlane.f32.xlu1 %v142_v33 }
  0x3c   :  { %151 = vadd.xlane.f32.xlu0 %v150_v37 }
  0x3e   :  { %159 = vadd.xlane.f32.xlu1 %v158_v40 }
  0x40   :  { %167 = vadd.xlane.f32.xlu0 %v166_v43 }
  0x42   :  { %175 = vadd.xlane.f32.xlu1 %v174_v44 }
  0xbd   :  { %v120_v46 = vpop.xlane.xlu0 %119 }
  0xbe   :  { %v177_v47 = vmul.f32 0.17677669, %v120_v46 }
  0xbf   :  { %v136_v48 = vpop.xlane.xlu1 %135 }
  0xc0   :  { %v186_v49 = vsel %vm185_vm0, %v177_v47, -inf  ;;  %v179_v50 = vmul.f32 0.17677669, %v136_v48 }
  0xc1   :  { %v187_v51 = vrot.slane %v186_v49, 4  ;;  %v128_v52 = vpop.xlane.xlu0 %127 }
  0xc2   :  { %v200_v53 = vsel %vm185_vm0, %v179_v50, -inf  ;;  %v178_v54 = vmul.f32 0.17677669, %v128_v52 }
  0xc3   :  { %v188_v55 = vmax.f32 %v186_v49, %v187_v51  ;;  %v201_v56 = vrot.slane %v200_v53, 4  ;;  %v144_v57 = vpop.xlane.xlu1 %143 }
  0xc4   :  { %v193_v58 = vsel %vm185_vm0, %v178_v54, -inf  ;;  %v619_v59 = vmul.f32 0.17677669, %v144_v57 }
  0xc5   :  { %v189_v60 = vrot.slane %v188_v55, 2  ;;  %v202_v61 = vmax.f32 %v200_v53, %v201_v56  ;;  %v194_v62 = vrot.slane %v193_v58, 4  ;;  %v152_v63 = vpop.xlane.xlu0 %151 }
  0xc6   :  { %v207_v0 = vsel %vm185_vm0, %v619_v59, -inf  ;;  %v623_v1 = vmul.f32 0.17677669, %v152_v63 }
  0xc7   :  { %v190_v2 = vmax.f32 %v188_v55, %v189_v60  ;;  %v203_v3 = vrot.slane %v202_v61, 2  ;;  %v195_v4 = vmax.f32 %v193_v58, %v194_v62  ;;  %v208_v5 = vrot.slane %v207_v0, 4  ;;  %v160_v6 = vpop.xlane.xlu1 %159 }
  0xc8   :  { %v214_v7 = vsel %vm185_vm0, %v623_v1, -inf  ;;  %v182_v8 = vmul.f32 0.17677669, %v160_v6 }
  0xc9   :  { %v191_v9 = vrot.slane %v190_v2, 1  ;;  %v204_v10 = vmax.f32 %v202_v61, %v203_v3  ;;  %v196_v11 = vrot.slane %v195_v4, 2  ;;  %v209_v12 = vmax.f32 %v207_v0, %v208_v5  ;;  %v168_v13 = vpop.xlane.xlu0 %167 }
  0xca   :  { %v215_v14 = vrot.slane %v214_v7, 4  ;;  %v221_v15 = vsel %vm185_vm0, %v182_v8, -inf  ;;  %v183_v16 = vmul.f32 0.17677669, %v168_v13 }
  0xcb   :  { %v192_v17 = vmax.f32 %v190_v2, %v191_v9  ;;  %v205_v18 = vrot.slane %v204_v10, 1  ;;  %v197_v19 = vmax.f32 %v195_v4, %v196_v11  ;;  %v210_v20 = vrot.slane %v209_v12, 2  ;;  %v176_v21 = vpop.xlane.xlu1 %175 }
  0xcc   :  { %v216_v22 = vmax.f32 %v214_v7, %v215_v14  ;;  %v222_v23 = vrot.slane %v221_v15, 4  ;;  %v228_v24 = vsel %vm185_vm0, %v183_v16, -inf  ;;  %v184_v25 = vmul.f32 0.17677669, %v176_v21 }
  0xcd   :  { %v242_v26 = vsub.f32 %v177_v47, %v192_v17  ;;  %v206_v27 = vmax.f32 %v204_v10, %v205_v18  ;;  %v198_v28 = vrot.slane %v197_v19, 1  ;;  %v211_v29 = vmax.f32 %v209_v12, %v210_v20 }
  0xce   :  { %v217_v30 = vrot.slane %v216_v22, 2  ;;  %v223_v31 = vmax.f32 %v221_v15, %v222_v23  ;;  %v229_v32 = vrot.slane %v228_v24, 4  ;;  %v235_v33 = vsel %vm185_vm0, %v184_v25, -inf }
  0xcf   :  { %v250_v34 = vmul.f32 1.442695, %v242_v26  ;;  %v244_v35 = vsub.f32 %v179_v50, %v206_v27  ;;  %v199_v36 = vmax.f32 %v197_v19, %v198_v28  ;;  %v212_v37 = vrot.slane %v211_v29, 1 }
  0xd0   :  { %v218_v38 = vmax.f32 %v216_v22, %v217_v30  ;;  %v224_v39 = vrot.slane %v223_v31, 2  ;;  %v230_v40 = vmax.f32 %v228_v24, %v229_v32  ;;  %v236_v41 = vrot.slane %v235_v33, 4 }
  0xd1   :  { %455 = vpow2.f32 %v250_v34  ;;  %v254_v42 = vmul.f32 1.442695, %v244_v35  ;;  %v243_v43 = vsub.f32 %v178_v54, %v199_v36  ;;  %v213_v44 = vmax.f32 %v211_v29, %v212_v37 }
  0xd2   :  { %v219_v45 = vrot.slane %v218_v38, 1  ;;  %v225_v46 = vmax.f32 %v223_v31, %v224_v39  ;;  %v231_v47 = vrot.slane %v230_v40, 2  ;;  %v237_v48 = vmax.f32 %v235_v33, %v236_v41 }
  0xd3   :  { %457 = vpow2.f32 %v254_v42  ;;  %v252_v49 = vmul.f32 1.442695, %v243_v43  ;;  %v245_v51 = vsub.f32 %v619_v59, %v213_v44 }
  0xd4   :  { %v220_v52 = vmax.f32 %v218_v38, %v219_v45  ;;  %v226_v50 = vrot.slane %v225_v46, 1  ;;  %v232_v53 = vmax.f32 %v230_v40, %v231_v47  ;;  %v238_v55 = vrot.slane %v237_v48, 2 }
  0xd5   :  { %459 = vpow2.f32 %v252_v49  ;;  %v256_v56 = vmul.f32 1.442695, %v245_v51 }
  0xd6   :  { %v246_v57 = vsub.f32 %v623_v1, %v220_v52  ;;  %v227_v58 = vmax.f32 %v225_v46, %v226_v50  ;;  %v233_v60 = vrot.slane %v232_v53, 1  ;;  %v239_v54 = vmax.f32 %v237_v48, %v238_v55 }
  0xd7   :  { %461 = vpow2.f32 %v256_v56 }
  0xd8   :  { %v258_v61 = vmul.f32 1.442695, %v246_v57  ;;  %v247_v62 = vsub.f32 %v182_v8, %v227_v58  ;;  %v234_v63 = vmax.f32 %v232_v53, %v233_v60  ;;  %v240_v0 = vrot.slane %v239_v54, 1 }
  0xda   :  { %463 = vpow2.f32 %v258_v61  ;;  %v260_v2 = vmul.f32 1.442695, %v247_v62  ;;  %v248_v3 = vsub.f32 %v183_v16, %v234_v63  ;;  %v241_v59 = vmax.f32 %v239_v54, %v240_v0 }
  0xdc   :  { %465 = vpow2.f32 %v260_v2  ;;  %v262_v4 = vmul.f32 1.442695, %v248_v3  ;;  %v249_v5 = vsub.f32 %v184_v25, %v241_v59 }
  0xde   :  { %v632_v6 = vpop.eup %455  ;;  %467 = vpow2.f32 %v262_v4  ;;  %v264_v7 = vmul.f32 1.442695, %v249_v5 }
  0xdf   :  { %v266_v1 = vsel %vm185_vm0, %v632_v6, 0.0 }
  0xe0   :  { %v636_v9 = vpop.eup %457  ;;  %469 = vpow2.f32 %v264_v7  ;;  %v267_v8 = vrot.slane %v266_v1, 4 }
  0xe1   :  { %v280_v10 = vsel %vm185_vm0, %v636_v9, 0.0 }
  0xe2   :  { %v640_v11 = vpop.eup %459  ;;  %v268_v12 = vadd.f32 %v267_v8, %v266_v1  ;;  %v281_v13 = vrot.slane %v280_v10, 4 }
  0xe3   :  { %v273_v14 = vsel %vm185_vm0, %v640_v11, 0.0 }
  0xe4   :  { %v644_v15 = vpop.eup %461  ;;  %v269_v16 = vrot.slane %v268_v12, 2  ;;  %v274_v17 = vrot.slane %v273_v14, 4  ;;  %v282_v18 = vadd.f32 %v281_v13, %v280_v10 }
  0xe5   :  { %v287_v19 = vsel %vm185_vm0, %v644_v15, 0.0 }
  0xe6   :  { %v270_v20 = vadd.f32 %v269_v16, %v268_v12  ;;  %v275_v21 = vadd.f32 %v274_v17, %v273_v14  ;;  %v283_v22 = vrot.slane %v282_v18, 2  ;;  %v288_v23 = vrot.slane %v287_v19, 4 }
  0xe7   :  { %v648_v24 = vpop.eup %463 }
  0xe8   :  { %v271_v25 = vrot.slane %v270_v20, 1  ;;  %v276_v26 = vrot.slane %v275_v21, 2  ;;  %v284_v27 = vadd.f32 %v283_v22, %v282_v18  ;;  %v294_v28 = vsel %vm185_vm0, %v648_v24, 0.0 }
  0xe9   :  { %v652_v29 = vpop.eup %465  ;;  %v295_v30 = vrot.slane %v294_v28, 4  ;;  %v289_v31 = vadd.f32 %v288_v23, %v287_v19 }
  0xea   :  { %v272_v32 = vadd.f32 %v271_v25, %v270_v20  ;;  %v277_v33 = vadd.f32 %v276_v26, %v275_v21  ;;  %v285_v34 = vrot.slane %v284_v27, 1  ;;  %v301_v35 = vsel %vm185_vm0, %v652_v29, 0.0 }
  0xeb   :  { %v656_v36 = vpop.eup %467  ;;  %v296_v37 = vadd.f32 %v295_v30, %v294_v28  ;;  %v290_v38 = vrot.slane %v289_v31, 2  ;;  %v302_v39 = vrot.slane %v301_v35, 4 }
  0xec   :  { %471 = vrcp.f32 %v272_v32  ;;  %v278_v40 = vrot.slane %v277_v33, 1  ;;  %v286_v41 = vadd.f32 %v285_v34, %v284_v27  ;;  %v308_v42 = vsel %vm185_vm0, %v656_v36, 0.0 }
  0xed   :  { %v660_v43 = vpop.eup %469  ;;  %v297_v44 = vrot.slane %v296_v37, 2  ;;  %v291_v45 = vadd.f32 %v290_v38, %v289_v31  ;;  %v303_v46 = vadd.f32 %v302_v39, %v301_v35  ;;  %v309_v47 = vrot.slane %v308_v42, 4 }
  0xee   :  { %v279_v48 = vadd.f32 %v278_v40, %v277_v33  ;;  %473 = vrcp.f32 %v286_v41  ;;  %v315_v49 = vsel %vm185_vm0, %v660_v43, 0.0 }
  0xef   :  { %v298_v51 = vadd.f32 %v297_v44, %v296_v37  ;;  %v292_v52 = vrot.slane %v291_v45, 1  ;;  %v304_v50 = vrot.slane %v303_v46, 2  ;;  %v310_v53 = vadd.f32 %v309_v47, %v308_v42 }
  0xf0   :  { %475 = vrcp.f32 %v279_v48  ;;  %v316_v55 = vrot.slane %v315_v49, 4 }
  0xf1   :  { %v299_v56 = vrot.slane %v298_v51, 1  ;;  %v293_v57 = vadd.f32 %v292_v52, %v291_v45  ;;  %v305_v58 = vadd.f32 %v304_v50, %v303_v46  ;;  %v311_v60 = vrot.slane %v310_v53, 2 }
  0xf2   :  { %v317_v54 = vadd.f32 %v316_v55, %v315_v49 }
  0xf3   :  { %v300_v61 = vadd.f32 %v299_v56, %v298_v51  ;;  %v306_v62 = vrot.slane %v305_v58, 1  ;;  %v312_v63 = vadd.f32 %v311_v60, %v310_v53  ;;  %477 = vrcp.f32 %v293_v57  ;;  %v362_v51 = vld [vmem:[#allocation7] sm:$0xff]  ;;  %v364_v56 = vld [vmem:[#allocation7 + $0x10] sm:$0xff] }
  0xf4   :  { %v318_v0 = vrot.slane %v317_v54, 2 }
  0xf5   :  { %479 = vrcp.f32 %v300_v61  ;;  %v307_v2 = vadd.f32 %v306_v62, %v305_v58  ;;  %v313_v3 = vrot.slane %v312_v63, 1  ;;  %v366_v58 = vld [vmem:[#allocation7 + $0x20] sm:$0xff]  ;;  %v367_v62 = vld [vmem:[#allocation7 + $0x28] sm:$0xff] }
  0xf6   :  { %v319_v59 = vadd.f32 %v318_v0, %v317_v54  ;;  %v365_v54 = vld [vmem:[#allocation7 + $0x18] sm:$0xff] }
  0xf7   :  { %481 = vrcp.f32 %v307_v2  ;;  %v314_v4 = vadd.f32 %v313_v3, %v312_v63 }
  0xf8   :  { %v320_v5 = vrot.slane %v319_v59, 1 }
  0xf9   :  { %v472_v7 = vpop.eup %471  ;;  %483 = vrcp.f32 %v314_v4 }
  0xfa   :  { %v330_v1 = vmul.f32 %v472_v7, %v272_v32  ;;  %v321_v13 = vadd.f32 %v320_v5, %v319_v59 }
  0xfb   :  { %v474_v8 = vpop.eup %473 }
  0xfc   :  { %v338_v10 = vsub.f32 2.0, %v330_v1  ;;  %v332_v12 = vmul.f32 %v474_v8, %v286_v41  ;;  %485 = vrcp.f32 %v321_v13 }
  0xfd   :  { %v476_v14 = vpop.eup %475 }
  0xfe   :  { %v346_v16 = vmul.f32 %v472_v7, %v338_v10  ;;  %v331_v17 = vmul.f32 %v476_v14, %v279_v48  ;;  %v340_v20 = vsub.f32 2.0, %v332_v12 }
 0x100   :  { %v354_v18 = vmul.f32 %v632_v6, %v346_v16  ;;  %v339_v19 = vsub.f32 2.0, %v331_v17  ;;  %v478_v21 = vpop.eup %477  ;;  %v348_v27 = vmul.f32 %v474_v8, %v340_v20 }
 0x101   :  { %v333_v28 = vmul.f32 %v478_v21, %v293_v57 }
 0x102   :  { %v480_v22 = vpop.eup %479  ;;  %372 = vperm.xlu0 %452, %v354_v18   ;;  %v347_v23 = vmul.f32 %v476_v14, %v339_v19  ;;  %v356_v32 = vmul.f32 %v636_v9, %v348_v27 }
 0x103   :  { %v334_v25 = vmul.f32 %v480_v22, %v300_v61  ;;  %v341_v34 = vsub.f32 2.0, %v333_v28 }
 0x104   :  { %v355_v26 = vmul.f32 %v640_v11, %v347_v23  ;;  %v482_v30 = vpop.eup %481 }
 0x105   :  { %v342_v31 = vsub.f32 2.0, %v334_v25  ;;  %v335_v6 = vmul.f32 %v482_v30, %v307_v2  ;;  %v349_v38 = vmul.f32 %v478_v21, %v341_v34  ;;  %v368_v2 = vld [vmem:[#allocation7 + $0x30] sm:$0xff] }
 0x106   :  { %377 = vperm.xlu1 %453, %v355_v26   ;;  %v484_v35 = vpop.eup %483 }
 0x107   :  { %v350_v33 = vmul.f32 %v480_v22, %v342_v31  ;;  %v343_v39 = vsub.f32 2.0, %v335_v6  ;;  %v336_v40 = vmul.f32 %v484_v35, %v314_v4  ;;  %v357_v11 = vmul.f32 %v644_v15, %v349_v38  ;;  %v363_v15 = vld [vmem:[#allocation7 + $0x8] sm:$0xff]  ;;  %v369_v4 = vld [vmem:[#allocation7 + $0x38] sm:$0xff] }
 0x109   :  { %v358_v37 = vmul.f32 %v648_v24, %v350_v33  ;;  %v486_v41 = vpop.eup %485  ;;  %v351_v42 = vmul.f32 %v482_v30, %v343_v39  ;;  %v344_v44 = vsub.f32 2.0, %v336_v40 }
 0x10a   :  { %382 = vperm.xlu1 %453, %v356_v32   ;;  %v337_v45 = vmul.f32 %v486_v41, %v321_v13 }
 0x10b   :  { %v359_v9 = vmul.f32 %v652_v29, %v351_v42  ;;  %v352_v46 = vmul.f32 %v484_v35, %v344_v44 }
 0x10c   :  { %v345_v47 = vsub.f32 2.0, %v337_v45 }
 0x10d   :  { %v360_v48 = vmul.f32 %v656_v36, %v352_v46 }
 0x10e   :  { %392 = vperm.xlu1 %453, %v358_v37   ;;  %v353_v49 = vmul.f32 %v486_v41, %v345_v47 }
 0x110   :  { %v361_v24 = vmul.f32 %v660_v43, %v353_v49 }
 0x112   :  { %387 = vperm.xlu1 %453, %v357_v11  }
 0x116   :  { %397 = vperm.xlu1 %453, %v359_v9  }
 0x11a   :  { %402 = vperm.xlu1 %453, %v360_v48  }
 0x11e   :  { %407 = vperm.xlu1 %453, %v361_v24  }
 0x17d   :  { %v373_v52 = vpop.permute.xlu0 %372 }
 0x17e   :  { %v410_v50 = vmul.f32 %v373_v52, %v362_v51 }
 0x180   :  { %418 = vst [vmem:[#allocation8] sm:$0xff] %v410_v50 }
 0x181   :  { %v378_v53 = vpop.permute.xlu1 %377 }
 0x182   :  { %v411_v55 = vmul.f32 %v378_v53, %v363_v15 }
 0x184   :  { %419 = vst [vmem:[#allocation8 + $0x8] sm:$0xff] %v411_v55 }
 0x185   :  { %v383_v29 = vpop.permute.xlu1 %382 }
 0x186   :  { %v412_v57 = vmul.f32 %v383_v29, %v364_v56 }
 0x188   :  { %420 = vst [vmem:[#allocation8 + $0x10] sm:$0xff] %v412_v57 }
 0x189   :  { %v393_v60 = vpop.permute.xlu1 %392 }
 0x18a   :  { %v414_v36 = vmul.f32 %v393_v60, %v366_v58 }
 0x18c   :  { %422 = vst [vmem:[#allocation8 + $0x20] sm:$0xff] %v414_v36 }
 0x18d   :  { %v388_v61 = vpop.permute.xlu1 %387 }
 0x18e   :  { %v413_v43 = vmul.f32 %v388_v61, %v365_v54 }
 0x190   :  { %421 = vst [vmem:[#allocation8 + $0x18] sm:$0xff] %v413_v43 }
 0x191   :  { %v398_v63 = vpop.permute.xlu1 %397 }
 0x192   :  { %v415_v0 = vmul.f32 %v398_v63, %v367_v62 }
 0x194   :  { %423 = vst [vmem:[#allocation8 + $0x28] sm:$0xff] %v415_v0 }
 0x195   :  { %v403_v3 = vpop.permute.xlu1 %402 }
 0x196   :  { %v416_v59 = vmul.f32 %v403_v3, %v368_v2 }
 0x198   :  { %424 = vst [vmem:[#allocation8 + $0x30] sm:$0xff] %v416_v59 }
 0x199   :  { %v408_v5 = vpop.permute.xlu1 %407 }
 0x19a   :  { %v417_v7 = vmul.f32 %v408_v5, %v369_v4 }
 0x19c   :  { %425 = vst [vmem:[#allocation8 + $0x38] sm:$0xff] %v417_v7 }
 0x19d   :  { %558 = shalt.err (!%p555_p5)
}
 0x19e   :  { %437 = dma.vmem_to_hbm [thread:$0]  %s432_s2, 1024, %s681_s3, [#allocation4], %s574_s15, %s574_s15, %s575_s16  }
 0x19f   :  { %571 = dma.done.wait [#allocation4], 1024  }
 0x1a0   :  { %572 = vsyncadd [#allocation4], 4294966272 }
 0x1a1   :  { %441 = vsyncpa [#allocation3], 1 }
 0x1a2   :  { %442 = vsyncpa [#allocation6], 1 }
 0x1a3   :  { %443 = vsyncpa [#allocation4], 1 }

</bundles_post_ra>
